<compile_context>
chip_gen: v5e
topology: v5e:2x2
jax: 0.10.0
libtpu: 0.0.40
codegen_flags: <defaults>
</compile_context>

<pallas_src>
import functools

import jax
import jax.numpy as jnp
from jax.experimental import pallas as pl
from jax.experimental.pallas import tpu as pltpu

_LANE = 128          # lane width: every feature dim padded to a multiple of this
_BF16_SUBLANE = 16   # bf16 packs 16 rows per vreg -> batch tiles are multiples of 16
_F32_SUBLANE = 8     # f32 sublane count (bias slab height)


def _round_up(x, m):
    return ((x + m - 1) // m) * m


def _choose_batch_tile(batch, block_b):
    """Pick (batch_tile, padded_batch).

    - tile is a multiple of 16 (bf16-native sublane packing)
    - tile <= block_b (default 256: big enough to amortize the ~0.35us
      per-grid-step overhead, small enough that f32 intermediates stay mostly
      in vregs on v5e)
    - if the whole batch fits one tile (and is bigger than one vreg's worth of
      rows), split it into two tiles so v7x's second TensorCore is not idle.
    """
    block_b = max(_BF16_SUBLANE, _round_up(block_b, _BF16_SUBLANE))
    if batch <= _BF16_SUBLANE:
        return _BF16_SUBLANE, _BF16_SUBLANE          # grid=(1,) — tiny RL batch
    tb = min(block_b, _round_up(batch, _BF16_SUBLANE))
    if _round_up(batch, tb) == tb:
        # Single tile: halve it (16-aligned) so the grid has >=2 parallel steps.
        tb = _round_up(-(-batch // 2), _BF16_SUBLANE)
    bp = _round_up(batch, tb)
    return tb, bp


def _mlp_kernel(x_ref, w_ref, b_ref, o_ref):
    """One batch tile of the 3-layer MLP.

    x_ref: (TB, F)    bf16 activations (zero-padded features)
    w_ref: (3, F, F)  bf16 stacked weights [fc1, fc2, fc3], zero-padded
    b_ref: (8, F)     f32 biases in rows 0..2, zero-padded
    o_ref: (TB, F)    f32 logits (only [:, :n_actions] is meaningful)
    """
    x = x_ref[...]
    b = b_ref[...]
    wdt = w_ref.dtype

    h = jnp.dot(x, w_ref[0], preferred_element_type=jnp.float32) + b[0:1, :]
    h = jnp.maximum(h, 0.0)
    h = jnp.dot(h.astype(wdt), w_ref[1], preferred_element_type=jnp.float32) + b[1:2, :]
    h = jnp.maximum(h, 0.0)
    o_ref[...] = (jnp.dot(h.astype(wdt), w_ref[2], preferred_element_type=jnp.float32)
                  + b[2:3, :]).astype(o_ref.dtype)


def init_params(key, input_dims, fc1_dims, fc2_dims, n_actions,
                weight_dtype=jnp.bfloat16, feature_align=_LANE):
    """nn.Linear-style init U(-1/sqrt(fan_in), 1/sqrt(fan_in)).

    All feature dims are zero-padded to one common lane-aligned width F so the
    three weight matrices stack into a single (3, F, F) array (one DMA) and the
    biases into a single (8, F) f32 slab (one (8,128)-aligned tile).
    Zero padding keeps the padded lanes mathematically inert.
    Returns (params_dict, dims_tuple).
    """
    dims = (int(input_dims), int(fc1_dims), int(fc2_dims), int(n_actions))
    F = max(_round_up(d, feature_align) for d in dims)
    ks = jax.random.split(key, 6)

    def linear(kw, kb, fan_in, fan_out):
        bound = 1.0 / (fan_in ** 0.5)
        w = jax.random.uniform(kw, (fan_in, fan_out), jnp.float32, -bound, bound)
        bias = jax.random.uniform(kb, (fan_out,), jnp.float32, -bound, bound)
        w_p = jnp.zeros((F, F), jnp.float32).at[:fan_in, :fan_out].set(w)
        b_p = jnp.zeros((F,), jnp.float32).at[:fan_out].set(bias)
        return w_p, b_p

    w1, b1 = linear(ks[0], ks[1], dims[0], dims[1])
    w2, b2 = linear(ks[2], ks[3], dims[1], dims[2])
    w3, b3 = linear(ks[4], ks[5], dims[2], dims[3])

    w = jnp.stack([w1, w2, w3]).astype(weight_dtype)                 # (3, F, F)
    b = (jnp.zeros((_F32_SUBLANE, F), jnp.float32)
         .at[0].set(b1).at[1].set(b2).at[2].set(b3))                 # (8, F)
    return {"w": w, "b": b}, dims


@functools.partial(jax.jit, static_argnames=("dims", "block_b"))
def generic_network_forward(x, w, b, *, dims, block_b=256):
    """x: [B, input_dims] (or [input_dims]) float32, or a pre-padded [B, F]
    bf16 observation buffer (padded lanes must be zero). Returns f32 logits
    [B, n_actions] (or [n_actions]).  Everything — pad, cast, kernel, slice —
    lives inside this single jit so no standalone HLO launches remain."""
    input_dims, _, _, n_actions = dims
    F = w.shape[-1]

    x = jnp.asarray(x)
    squeeze = x.ndim == 1
    if squeeze:
        x = x[None, :]
    B = x.shape[0]

    tb, bp = _choose_batch_tile(B, block_b)

    xp = x.astype(w.dtype)
    if xp.shape[1] != F or B != bp:
        xp = jnp.zeros((bp, F), w.dtype).at[:B, :xp.shape[1]].set(xp)

    grid = (bp // tb,)
    out = pl.pallas_call(
        _mlp_kernel,
        out_shape=jax.ShapeDtypeStruct((bp, F), jnp.float32),
        grid=grid,
        in_specs=[
            # Activations: move with the batch grid.
            pl.BlockSpec((tb, F), lambda i: (i, 0)),
            # Stacked weights + bias slab: constant index_map -> DMA'd once,
            # VMEM-resident across all grid steps (~200 KiB double-buffered).
            pl.BlockSpec((3, F, F), lambda i: (0, 0, 0)),
            pl.BlockSpec((_F32_SUBLANE, F), lambda i: (0, 0)),
        ],
        out_specs=pl.BlockSpec((tb, F), lambda i: (i, 0)),
        compiler_params=pltpu.CompilerParams(
            dimension_semantics=("parallel",),  # batch tiles shard across TCs on v7x
        ),
    )(xp, w, b)

    out = out[:B, :n_actions]
    if squeeze:
        out = out[0]
    return out


def _reference(x, params, dims):
    """Pure-JAX reference using the same bf16 weights / f32 accumulation path."""
    input_dims, fc1_dims, fc2_dims, n_actions = dims
    w, b = params["w"], params["b"]

    def lin(h, l, fin, fout):
        wl = w[l, :fin, :fout]
        return jnp.dot(h.astype(wl.dtype), wl,
                       preferred_element_type=jnp.float32) + b[l, :fout]

    h1 = jnp.maximum(lin(x, 0, input_dims, fc1_dims), 0.0)
    h2 = jnp.maximum(lin(h1, 1, fc1_dims, fc2_dims), 0.0)
    return lin(h2, 2, fc2_dims, n_actions)


if __name__ == "__main__":
    # Shapes consistent with GenericNetwork(alpha, input_dims=[8],
    # fc1_dims=32, fc2_dims=32, n_actions=4), batch of 2 observations.
    batch, input_dims, fc1_dims, fc2_dims, n_actions = 2, 8, 32, 32, 4

    key = jax.random.PRNGKey(0)
    k_params, k_x, k_big = jax.random.split(key, 3)
    params, dims = init_params(k_params, input_dims, fc1_dims, fc2_dims, n_actions)

    # --- tiny RL batch (grid=(1,)) ---
    x = jax.random.normal(k_x, (batch, input_dims), jnp.float32)
    out = jax.block_until_ready(
        generic_network_forward(x, params["w"], params["b"], dims=dims))
    assert out.shape == (batch, n_actions)
    ref = _reference(x, params, dims)
    assert jnp.allclose(out, ref, atol=1e-4, rtol=1e-4), (
        f"max abs err {jnp.max(jnp.abs(out - ref))}")

    # --- single observation (mirrors choose_action path) ---
    out1 = jax.block_until_ready(
        generic_network_forward(x[0], params["w"], params["b"], dims=dims))
    assert out1.shape == (n_actions,)
    assert jnp.allclose(out1, ref[0], atol=1e-4, rtol=1e-4)

    # --- larger batch exercising the multi-tile / megacore grid path ---
    xb = jax.random.normal(k_big, (40, input_dims), jnp.float32)
    outb = jax.block_until_ready(
        generic_network_forward(xb, params["w"], params["b"], dims=dims))
    refb = _reference(xb, params, dims)
    assert outb.shape == (40, n_actions)
    assert jnp.allclose(outb, refb, atol=1e-4, rtol=1e-4), (
        f"max abs err {jnp.max(jnp.abs(outb - refb))}")

    print("KERNEL_OK")
</pallas_src>

<mosaic_0001>
module attributes {stable_mosaic.version = 11 : i64} {
  func.func @_mlp_kernel(%arg0: i32, %arg1: memref<16x128xbf16, #tpu.memory_space<vmem>>, %arg2: memref<3x128x128xbf16, #tpu.memory_space<vmem>>, %arg3: memref<8x128xf32, #tpu.memory_space<vmem>>, %arg4: memref<16x128xf32, #tpu.memory_space<vmem>>) attributes {dimension_semantics = [#tpu.dimension_semantics<parallel>], iteration_bounds = array<i64: 1>, scalar_prefetch = 0 : i64, scratch_operands = 0 : i64, tpu.core_type = #tpu.core_type<tc>, window_params = [{transform_indices = @transform_0, window_bounds = array<i64: 16, 128>}, {pipeline_mode = #tpu.pipeline_mode<synchronous>, transform_indices = @transform_1, window_bounds = array<i64: 3, 128, 128>}, {pipeline_mode = #tpu.pipeline_mode<synchronous>, transform_indices = @transform_2, window_bounds = array<i64: 8, 128>}, {transform_indices = @transform_3, window_bounds = array<i64: 16, 128>}]} {
    %c0 = arith.constant 0 : index
    %c0_0 = arith.constant 0 : index
    %0 = vector.load %arg1[%c0, %c0_0] : memref<16x128xbf16, #tpu.memory_space<vmem>>, vector<16x128xbf16>
    %c0_1 = arith.constant 0 : index
    %c0_2 = arith.constant 0 : index
    %1 = vector.load %arg3[%c0_1, %c0_2] : memref<8x128xf32, #tpu.memory_space<vmem>>, vector<8x128xf32>
    %c0_3 = arith.constant 0 : index
    %c0_4 = arith.constant 0 : index
    %c0_5 = arith.constant 0 : index
    %2 = vector.load %arg2[%c0_3, %c0_4, %c0_5] : memref<3x128x128xbf16, #tpu.memory_space<vmem>>, vector<1x128x128xbf16>
    %3 = vector.shape_cast %2 : vector<1x128x128xbf16> to vector<128x128xbf16>
    %cst = arith.constant dense<0.000000e+00> : vector<16x128xf32>
    %4 = tpu.matmul %0, %3, %cst {dimension_numbers = #tpu.dot_dimension_numbers<[1], [0], [0], [1], [0, 0, 1, 1], [], []>} : vector<16x128xbf16>, vector<128x128xbf16>, vector<16x128xf32> -> vector<16x128xf32>
    %5 = vector.extract_strided_slice %1 {offsets = [0, 0], sizes = [1, 128], strides = [1, 1]} : vector<8x128xf32> to vector<1x128xf32>
    %6 = vector.broadcast %5 : vector<1x128xf32> to vector<16x128xf32>
    %7 = arith.addf %4, %6 : vector<16x128xf32>
    %cst_6 = arith.constant 0.000000e+00 : f32
    %8 = vector.broadcast %cst_6 : f32 to vector<16x128xf32>
    %9 = arith.maximumf %7, %8 : vector<16x128xf32>
    %10 = arith.truncf %9 : vector<16x128xf32> to vector<16x128xbf16>
    %c1 = arith.constant 1 : index
    %c0_7 = arith.constant 0 : index
    %c0_8 = arith.constant 0 : index
    %11 = vector.load %arg2[%c1, %c0_7, %c0_8] : memref<3x128x128xbf16, #tpu.memory_space<vmem>>, vector<1x128x128xbf16>
    %12 = vector.shape_cast %11 : vector<1x128x128xbf16> to vector<128x128xbf16>
    %cst_9 = arith.constant dense<0.000000e+00> : vector<16x128xf32>
    %13 = tpu.matmul %10, %12, %cst_9 {dimension_numbers = #tpu.dot_dimension_numbers<[1], [0], [0], [1], [0, 0, 1, 1], [], []>} : vector<16x128xbf16>, vector<128x128xbf16>, vector<16x128xf32> -> vector<16x128xf32>
    %14 = vector.extract_strided_slice %1 {offsets = [1, 0], sizes = [1, 128], strides = [1, 1]} : vector<8x128xf32> to vector<1x128xf32>
    %15 = vector.broadcast %14 : vector<1x128xf32> to vector<16x128xf32>
    %16 = arith.addf %13, %15 : vector<16x128xf32>
    %cst_10 = arith.constant 0.000000e+00 : f32
    %17 = vector.broadcast %cst_10 : f32 to vector<16x128xf32>
    %18 = arith.maximumf %16, %17 : vector<16x128xf32>
    %19 = arith.truncf %18 : vector<16x128xf32> to vector<16x128xbf16>
    %c2 = arith.constant 2 : index
    %c0_11 = arith.constant 0 : index
    %c0_12 = arith.constant 0 : index
    %20 = vector.load %arg2[%c2, %c0_11, %c0_12] : memref<3x128x128xbf16, #tpu.memory_space<vmem>>, vector<1x128x128xbf16>
    %21 = vector.shape_cast %20 : vector<1x128x128xbf16> to vector<128x128xbf16>
    %cst_13 = arith.constant dense<0.000000e+00> : vector<16x128xf32>
    %22 = tpu.matmul %19, %21, %cst_13 {dimension_numbers = #tpu.dot_dimension_numbers<[1], [0], [0], [1], [0, 0, 1, 1], [], []>} : vector<16x128xbf16>, vector<128x128xbf16>, vector<16x128xf32> -> vector<16x128xf32>
    %23 = vector.extract_strided_slice %1 {offsets = [2, 0], sizes = [1, 128], strides = [1, 1]} : vector<8x128xf32> to vector<1x128xf32>
    %24 = vector.broadcast %23 : vector<1x128xf32> to vector<16x128xf32>
    %25 = arith.addf %22, %24 : vector<16x128xf32>
    %c0_14 = arith.constant 0 : index
    %c0_15 = arith.constant 0 : index
    %26 = vector.load %arg4[%c0_14, %c0_15] : memref<16x128xf32, #tpu.memory_space<vmem>>, vector<16x128xf32>
    tpu.vector_store %arg4[%c0_14, %c0_15], %25 {strides = array<i32>} : memref<16x128xf32, #tpu.memory_space<vmem>>, vector<16x128xf32>,
    return
  }
  func.func @transform_0(%arg0: i32) -> (i32, i32) {
    %c0_i32 = arith.constant 0 : i32
    %c0_i32_0 = arith.constant 0 : i32
    return %arg0, %c0_i32 : i32, i32
  }
  func.func @transform_1(%arg0: i32) -> (i32, i32, i32) {
    %c0_i32 = arith.constant 0 : i32
    %c0_i32_0 = arith.constant 0 : i32
    %c0_i32_1 = arith.constant 0 : i32
    %c0_i32_2 = arith.constant 0 : i32
    return %c0_i32, %c0_i32_0, %c0_i32_1 : i32, i32, i32
  }
  func.func @transform_2(%arg0: i32) -> (i32, i32) {
    %c0_i32 = arith.constant 0 : i32
    %c0_i32_0 = arith.constant 0 : i32
    %c0_i32_1 = arith.constant 0 : i32
    return %c0_i32, %c0_i32_0 : i32, i32
  }
  func.func @transform_3(%arg0: i32) -> (i32, i32) {
    %c0_i32 = arith.constant 0 : i32
    %c0_i32_0 = arith.constant 0 : i32
    return %arg0, %c0_i32 : i32, i32
  }
}

</mosaic_0001>

<bundles_post_ra>
// kernel: generic_network_forward.1
= control target key start
LH: loop header
LB: loop body
LE: loop exit
PB: predicated region body
PF: predicated region fallthrough
CT: control target
= control target key end

     0   :  { %8 = vsyncpa [#allocation3], 0  ;;  %s445_s15 = smov [#allocation2]   ;;  %s446_s17 = smov 64   ;;  %s483_s0 = inlined_call_operand.vmem [shape: bf16[16,128], index: 0, kind: input, shape index: {}]   ;;  %s484_s1 = inlined_call_operand.hbm [shape: bf16[3,128,128], index: 1, kind: input, shape index: {}]   ;;  %s485_s2 = inlined_call_operand.vmem [shape: f32[8,128], index: 2, kind: input, shape index: {}]   ;;  %s486_s3 = inlined_call_operand.vmem [shape: f32[16,128], index: 3, kind: output, shape index: {}]  }
   0x1   :  { %s15_s14 = sshll.u32 %s484_s1, 4  ;;  %s17_s16 = sshll.u32 %s445_s15, 4  ;;  %s16_s14 = int_to_ptr.hbm [resolvable:$true] %s15_s14  ;;  %s18_s16 = int_to_ptr.vmem [resolvable:$true] %s17_s16 }
   0x2   :  { %s447_s18 = smov 4  }
   0x3   :  { %23 = dma.hbm_to_vmem [thread:$0]  %s16_s14, 3072, %s18_s16, [#allocation3], %s446_s17, %s446_s17, %s447_s18  }
   0x4   :  { %443 = dma.done.wait [#allocation3], 3072  }
   0x5   :  { %444 = vsyncadd [#allocation3], 4294964224  ;;  %v399_v0 = vld [vmem:[#allocation2 + $0x38] sm:$0xff]  ;;  %v398_v1 = vld [vmem:[#allocation2 + $0x30] sm:$0xff] }
   0x6   :  { %104 = vmatpush.bf16.msra.mxu0 %v399_v0  ;;  %v407_v2 = vld [vmem:[#allocation2 + $0x78] sm:$0xff]  ;;  %v406_v3 = vld [vmem:[#allocation2 + $0x70] sm:$0xff]  ;;  %v397_v4 = vld [vmem:[#allocation2 + $0x28] sm:$0xff] }
   0x7   :  { %187 = vmatpush.bf16.msra.mxu1 %v407_v2  ;;  %v405_v5 = vld [vmem:[#allocation2 + $0x68] sm:$0xff]  ;;  %v396_v6 = vld [vmem:[#allocation2 + $0x20] sm:$0xff]  ;;  %v395_v8 = vld [vmem:[#allocation2 + $0x18] sm:$0xff] }
   0x8   :  { %v404_v7 = vld [vmem:[#allocation2 + $0x60] sm:$0xff]  ;;  %v394_v9 = vld [vmem:[#allocation2 + $0x10] sm:$0xff]  ;;  %v393_v10 = vld [vmem:[#allocation2 + $0x8] sm:$0xff] }
   0x9   :  { %v392_v11 = vld [vmem:[#allocation2] sm:$0xff]  ;;  %v403_v13 = vld [vmem:[#allocation2 + $0x58] sm:$0xff]  ;;  %v402_v14 = vld [vmem:[#allocation2 + $0x50] sm:$0xff] }
   0xa   :  { %105 = vmatpush.bf16.msra.mxu0 %v398_v1  ;;  %v391_v12 = vld [vmem:[%s483_s0] sm:$0xff]  ;;  %v401_v15 = vld [vmem:[#allocation2 + $0x48] sm:$0xff]  ;;  %v415_v17 = vld [vmem:[#allocation2 + $0xb8] sm:$0xff] }
   0xb   :  { %188 = vmatpush.bf16.msra.mxu1 %v406_v3  ;;  %v400_v16 = vld [vmem:[#allocation2 + $0x40] sm:$0xff]  ;;  %270 = vmatpush.bf16.msra.mxu2 %v415_v17  ;;  %v414_v18 = vld [vmem:[#allocation2 + $0xb0] sm:$0xff]  ;;  %v413_v19 = vld [vmem:[#allocation2 + $0xa8] sm:$0xff] }
   0xc   :  { %v412_v20 = vld [vmem:[#allocation2 + $0xa0] sm:$0xff]  ;;  %v411_v30 = vld [vmem:[#allocation2 + $0x98] sm:$0xff]  ;;  %v410_v31 = vld [vmem:[#allocation2 + $0x90] sm:$0xff] }
   0xd   :  { %v32_v21 = vld [vmem:[%s485_s2] sm:$0xff]  ;;  %v409_v32 = vld [vmem:[#allocation2 + $0x88] sm:$0xff] }
   0xe   :  { %106 = vmatpush.bf16.msra.mxu0 %v397_v4  ;;  %v49_v23 = vperm.slane %v32_v21, 0  ;;  %v408_v33 = vld [vmem:[#allocation2 + $0x80] sm:$0xff]  ;;  %v138_v35 = vperm.slane %v32_v21, 1  ;;  %v221_v42 = vperm.slane %v32_v21, 2 }
   0xf   :  { %189 = vmatpush.bf16.msra.mxu1 %v405_v5  ;;  %271 = vmatpush.bf16.msra.mxu2 %v414_v18 }
  0x12   :  { %107 = vmatpush.bf16.msra.mxu0 %v396_v6 }
  0x13   :  { %190 = vmatpush.bf16.msra.mxu1 %v404_v7  ;;  %272 = vmatpush.bf16.msra.mxu2 %v413_v19 }
  0x16   :  { %108 = vmatpush.bf16.msra.mxu0 %v395_v8 }
  0x17   :  { %191 = vmatpush.bf16.msra.mxu1 %v403_v13  ;;  %273 = vmatpush.bf16.msra.mxu2 %v412_v20 }
  0x1a   :  { %109 = vmatpush.bf16.msra.mxu0 %v394_v9 }
  0x1b   :  { %192 = vmatpush.bf16.msra.mxu1 %v402_v14  ;;  %274 = vmatpush.bf16.msra.mxu2 %v411_v30 }
  0x1e   :  { %110 = vmatpush.bf16.msra.mxu0 %v393_v10 }
  0x1f   :  { %193 = vmatpush.bf16.msra.mxu1 %v401_v15  ;;  %275 = vmatpush.bf16.msra.mxu2 %v410_v31 }
  0x22   :  { %111 = vmatpush.bf16.msra.mxu0 %v392_v11 }
  0x23   :  { %194 = vmatpush.bf16.msra.mxu1 %v400_v16  ;;  %276 = vmatpush.bf16.msra.mxu2 %v409_v32 }
  0x25   :  { %112 = vmatmul.bf16.vlgmr.msra.gmra.mxu0 %v391_v12 }
  0x27   :  { %277 = vmatpush.bf16.msra.mxu2 %v408_v33 }
  0xa2   :  { %v113_v22 = vpop.f32.mrf.mxu0 }
  0xa3   :  { %v114_v24 = vadd.f32 %v113_v22, %v49_v23 }
  0xa5   :  { %v118_v27 = vmax.f32 %v114_v24, 0.0 }
  0xaa   :  { %v115_v25 = vpop.f32.mrf.mxu0 }
  0xab   :  { %v116_v26 = vadd.f32 %v115_v25, %v49_v23 }
  0xad   :  { %v119_v28 = vmax.f32 %v116_v26, 0.0 }
  0xaf   :  { %v120_v29 = vpack.c.bf16 %v119_v28, %v118_v27 }
  0xb1   :  { %195 = vmatmul.bf16.vlgmr.msra.gmra.mxu1 %v120_v29 }
 0x12e   :  { %v196_v34 = vpop.f32.mrf.mxu1 }
 0x12f   :  { %v197_v36 = vadd.f32 %v196_v34, %v138_v35 }
 0x131   :  { %v201_v39 = vmax.f32 %v197_v36, 0.0 }
 0x136   :  { %v198_v37 = vpop.f32.mrf.mxu1 }
 0x137   :  { %v199_v38 = vadd.f32 %v198_v37, %v138_v35 }
 0x139   :  { %v202_v40 = vmax.f32 %v199_v38, 0.0 }
 0x13b   :  { %v203_v41 = vpack.c.bf16 %v202_v40, %v201_v39 }
 0x13d   :  { %278 = vmatmul.bf16.vlgmr.msra.gmra.mxu2 %v203_v41 }
 0x1c0   :  { %v279_v43 = vpop.f32.mrf.mxu2 }
 0x1c1   :  { %v280_v44 = vadd.f32 %v279_v43, %v221_v42 }
 0x1c3   :  { %284 = vst [vmem:[%s486_s3] sm:$0xff] %v280_v44 }
 0x1c8   :  { %v281_v45 = vpop.f32.mrf.mxu2 }
 0x1c9   :  { %v282_v46 = vadd.f32 %v281_v45, %v221_v42 }
 0x1cb   :  { %285 = vst [vmem:[%s486_s3 + $0x8] sm:$0xff] %v282_v46 }
 0x1cc   :  { %290 = vsyncpa [#allocation3], 1 }

</bundles_post_ra>
